<compile_context>
chip_gen: v7x
topology: tpu7x:2x2x1
jax: 0.10.0
libtpu: 0.0.40
codegen_flags: <defaults>
</compile_context>

<pallas_src>
import functools

import jax
import jax.numpy as jnp
from jax.experimental import pallas as pl
from jax.experimental.pallas import tpu as pltpu

_VMEM_LIMIT_BYTES = 32 * 1024 * 1024        # safe on v5e/v6e (128 MiB) & v7x (64 MiB)
_RESIDENT_BUDGET_BYTES = 24 * 1024 * 1024   # working-set cap for the resident path


def _round_up(x, m):
    return (x + m - 1) // m * m


# ---------------------------------------------------------------------------
# Kernels
# ---------------------------------------------------------------------------
def _cls_kernel_resident(x_ref, w_ref, b_ref, o_ref):
    # Weight/bias block indices are constant across the batch grid -> fetched
    # once and kept resident in VMEM.  Single reduction step: no scratch
    # accumulator, bias + sigmoid fused into the lane-dense store.
    logits = jnp.dot(x_ref[...], w_ref[...],
                     preferred_element_type=jnp.float32) + b_ref[...]
    o_ref[...] = jax.nn.sigmoid(logits).astype(o_ref.dtype)


def _cls_kernel_tiled(x_ref, w_ref, b_ref, o_ref, acc_ref):
    # 3-D grid (batch i, label j, reduction k); reduction axis is innermost.
    k = pl.program_id(2)

    @pl.when(k == 0)
    def _():
        acc_ref[...] = jnp.zeros_like(acc_ref)

    acc_ref[...] += jnp.dot(x_ref[...], w_ref[...],
                            preferred_element_type=jnp.float32)

    @pl.when(k == pl.num_programs(2) - 1)
    def _():
        o_ref[...] = jax.nn.sigmoid(acc_ref[...] + b_ref[...]).astype(o_ref.dtype)


# ---------------------------------------------------------------------------
# One-time parameter preparation (call at init, NOT per forward step)
# ---------------------------------------------------------------------------
def cls_prepare_params(weight, bias, *, param_dtype=jnp.bfloat16):
    """weight: [L, H] (nn.Linear layout), bias: [L].

    Returns (w_t, b2d, L): w_t [H, L_pad] in param_dtype (transposed, label
    axis zero-padded to a multiple of 128 lanes -> unmasked vst), b2d
    [1, L_pad] in f32.
    """
    L, H = weight.shape
    L_pad = max(128, _round_up(L, 128))
    w_t = jnp.zeros((H, L_pad), dtype=param_dtype)
    w_t = w_t.at[:, :L].set(weight.T.astype(param_dtype))
    b2d = jnp.zeros((1, L_pad), dtype=jnp.float32)
    b2d = b2d.at[:, :L].set(bias.astype(jnp.float32))
    return w_t, b2d, L


# ---------------------------------------------------------------------------
# Tile selection
# ---------------------------------------------------------------------------
def _pick_tb(B, n_label_tiles):
    tb = min(512, _round_up(B, 8))
    # v7x has 2 TensorCores; "parallel" axes are sharded across them.  Make
    # sure the parallel (i x j) portion of the grid has >= 2 blocks when the
    # batch allows it, so neither core idles.
    if n_label_tiles * pl.cdiv(B, tb) < 2 and B > 8:
        tb = max(8, _round_up(pl.cdiv(B, 2), 8))
    return tb


def _pick_tiled(B, H, L_pad):
    # Wide label tiles minimize re-streaming of x (traffic = x_bytes*L_pad/tn).
    if L_pad <= 1024:
        tn = L_pad
    else:
        tn = next(t for t in (1024, 512, 256, 128) if L_pad % t == 0)
    # Reduction tile must divide H exactly (reduction blocks must be exact);
    # None signals the caller to zero-pad H once.
    tk = next((t for t in (512, 256) if H % t == 0), None)
    tb = _pick_tb(B, L_pad // tn)
    return tb, tn, tk


# ---------------------------------------------------------------------------
# Forward
# ---------------------------------------------------------------------------
@functools.partial(jax.jit, static_argnames=("label_dim", "out_dtype", "force_tiled"))
def cls_forward(x, w_t, b2d, *, label_dim, out_dtype=None, force_tiled=False):
    """y = sigmoid(x @ W.T + b).  x: [B, H]; w_t: [H, L_pad]; b2d: [1, L_pad]."""
    B, H = x.shape
    Hw, L_pad = w_t.shape
    assert Hw == H, "w_t hidden dim must match x"
    if out_dtype is None:
        out_dtype = x.dtype
    w_itemsize = jnp.dtype(w_t.dtype).itemsize
    out_itemsize = jnp.dtype(out_dtype).itemsize

    # Cast activations to the streaming/compute dtype ONCE, outside the kernel
    # (bf16 path: half the x DMA bytes, no per-tile cast work).
    if x.dtype != w_t.dtype:
        x = x.astype(w_t.dtype)

    # -------------------- weight-resident fast path -------------------------
    tb_res = _pick_tb(B, 1)
    weight_bytes = H * L_pad * w_itemsize
    resident_ws = (2 * weight_bytes                       # weight (double-buffer worst case)
                   + 2 * tb_res * H * w_itemsize          # x tiles
                   + 2 * tb_res * L_pad * out_itemsize    # output tiles
                   + 2 * L_pad * 4)                       # bias
    use_resident = (not force_tiled) and resident_ws <= _RESIDENT_BUDGET_BYTES

    if use_resident:
        grid = (pl.cdiv(B, tb_res),)
        out_pad = pl.pallas_call(
            _cls_kernel_resident,
            out_shape=jax.ShapeDtypeStruct((B, L_pad), out_dtype),
            grid_spec=pltpu.PrefetchScalarGridSpec(
                num_scalar_prefetch=0,
                grid=grid,
                in_specs=[
                    pl.BlockSpec((tb_res, H), lambda i: (i, 0)),   # x batch tile
                    pl.BlockSpec((H, L_pad), lambda i: (0, 0)),    # resident weight
                    pl.BlockSpec((1, L_pad), lambda i: (0, 0)),    # resident bias
                ],
                out_specs=pl.BlockSpec((tb_res, L_pad), lambda i: (i, 0)),
            ),
            compiler_params=pltpu.CompilerParams(
                dimension_semantics=("parallel",),
                vmem_limit_bytes=_VMEM_LIMIT_BYTES,
            ),
        )(x, w_t, b2d)
        return out_pad[:B, :label_dim]

    # -------------------- tiled fallback (large weights) --------------------
    tb, tn, tk = _pick_tiled(B, H, L_pad)
    if tk is None:
        # H not divisible by a supported reduction tile: zero-pad the hidden
        # dim once (zeros contribute nothing to the dot).  Rare for real heads.
        Hp = _round_up(H, 256)
        x = jnp.pad(x, ((0, 0), (0, Hp - H)))
        w_t = jnp.pad(w_t, ((0, Hp - H), (0, 0)))
        H, tk = Hp, 256

    grid = (pl.cdiv(B, tb), L_pad // tn, H // tk)
    # NOTE: pipeline depth left at the default (2); pl.Buffered(3) on the x/w
    # specs is an optional few-percent knob if DMA issue latency shows up.
    out_pad = pl.pallas_call(
        _cls_kernel_tiled,
        out_shape=jax.ShapeDtypeStruct((B, L_pad), out_dtype),
        grid_spec=pltpu.PrefetchScalarGridSpec(
            num_scalar_prefetch=0,
            grid=grid,
            in_specs=[
                pl.BlockSpec((tb, tk), lambda i, j, k: (i, k)),  # x tile
                pl.BlockSpec((tk, tn), lambda i, j, k: (k, j)),  # weight tile
                pl.BlockSpec((1, tn), lambda i, j, k: (0, j)),   # bias tile
            ],
            out_specs=pl.BlockSpec((tb, tn), lambda i, j, k: (i, j)),
            scratch_shapes=[pltpu.VMEM((tb, tn), jnp.float32)],
        ),
        compiler_params=pltpu.CompilerParams(
            dimension_semantics=("parallel", "parallel", "arbitrary"),
            vmem_limit_bytes=_VMEM_LIMIT_BYTES,
        ),
    )(x, w_t, b2d)
    return out_pad[:B, :label_dim]


def cls_reference(x, weight, bias):
    return jax.nn.sigmoid(x @ weight.T + bias[None, :])


if __name__ == "__main__":
    key = jax.random.PRNGKey(0)
    batch, hidden_dim, label_dim = 8, 32, 16

    kx, kw, kb = jax.random.split(key, 3)
    x = jax.random.normal(kx, (batch, hidden_dim), dtype=jnp.float32)
    # Deterministic "nn.Linear"-style params (uniform in +/- 1/sqrt(hidden_dim))
    bound = 1.0 / (hidden_dim ** 0.5)
    weight = jax.random.uniform(kw, (label_dim, hidden_dim),
                                minval=-bound, maxval=bound, dtype=jnp.float32)
    bias = jax.random.uniform(kb, (label_dim,),
                              minval=-bound, maxval=bound, dtype=jnp.float32)

    ref = cls_reference(x, weight, bias)

    # f32 parameter path (weight-resident kernel): tight match.
    w_t32, b2d32, L = cls_prepare_params(weight, bias, param_dtype=jnp.float32)
    out32 = jax.block_until_ready(cls_forward(x, w_t32, b2d32, label_dim=L))
    assert out32.shape == (batch, label_dim)
    assert jnp.allclose(out32, ref, atol=1e-5, rtol=1e-5)

    # bf16 streaming path (default): looser tolerance (bf16 x and weight).
    w_t16, b2d16, L = cls_prepare_params(weight, bias)
    out16 = jax.block_until_ready(cls_forward(x, w_t16, b2d16, label_dim=L))
    assert out16.shape == (batch, label_dim)
    assert jnp.allclose(out16, ref, atol=2e-2, rtol=0)

    # Non-multiple-of-8 batch: exercises partial batch blocks (no jnp.pad copy).
    x10 = jax.random.normal(kx, (10, hidden_dim), dtype=jnp.float32)
    out10 = jax.block_until_ready(cls_forward(x10, w_t32, b2d32, label_dim=L))
    assert out10.shape == (10, label_dim)
    assert jnp.allclose(out10, cls_reference(x10, weight, bias),
                        atol=1e-5, rtol=1e-5)

    # Force the tiled (k-reduction) fallback so both kernels are covered.
    out_tiled = jax.block_until_ready(
        cls_forward(x, w_t32, b2d32, label_dim=L, force_tiled=True))
    assert out_tiled.shape == (batch, label_dim)
    assert jnp.allclose(out_tiled, ref, atol=1e-5, rtol=1e-5)

    print("KERNEL_OK")
</pallas_src>

<mosaic_0001>
module attributes {stable_mosaic.version = 11 : i64} {
  func.func @_cls_kernel_resident(%arg0: i32, %arg1: memref<8x32xf32, #tpu.memory_space<vmem>>, %arg2: memref<32x128xf32, #tpu.memory_space<vmem>>, %arg3: memref<1x128xf32, #tpu.memory_space<vmem>>, %arg4: memref<8x128xf32, #tpu.memory_space<vmem>>) attributes {dimension_semantics = [#tpu.dimension_semantics<parallel>], iteration_bounds = array<i64: 1>, scalar_prefetch = 0 : i64, scratch_operands = 0 : i64, tpu.core_type = #tpu.core_type<tc>, window_params = [{transform_indices = @transform_0, window_bounds = array<i64: 8, 32>}, {pipeline_mode = #tpu.pipeline_mode<synchronous>, transform_indices = @transform_1, window_bounds = array<i64: 32, 128>}, {pipeline_mode = #tpu.pipeline_mode<synchronous>, transform_indices = @transform_2, window_bounds = array<i64: 1, 128>}, {transform_indices = @transform_3, window_bounds = array<i64: 8, 128>}]} {
    %c0 = arith.constant 0 : index
    %c0_0 = arith.constant 0 : index
    %0 = vector.load %arg1[%c0, %c0_0] : memref<8x32xf32, #tpu.memory_space<vmem>>, vector<8x32xf32>
    %c0_1 = arith.constant 0 : index
    %c0_2 = arith.constant 0 : index
    %1 = vector.load %arg2[%c0_1, %c0_2] : memref<32x128xf32, #tpu.memory_space<vmem>>, vector<32x128xf32>
    %cst = arith.constant dense<0.000000e+00> : vector<8x128xf32>
    %2 = tpu.matmul %0, %1, %cst {dimension_numbers = #tpu.dot_dimension_numbers<[1], [0], [0], [1], [0, 0, 1, 1], [], []>} : vector<8x32xf32>, vector<32x128xf32>, vector<8x128xf32> -> vector<8x128xf32>
    %c0_3 = arith.constant 0 : index
    %c0_4 = arith.constant 0 : index
    %3 = vector.load %arg3[%c0_3, %c0_4] : memref<1x128xf32, #tpu.memory_space<vmem>>, vector<1x128xf32>
    %4 = vector.broadcast %3 : vector<1x128xf32> to vector<8x128xf32>
    %5 = arith.addf %2, %4 : vector<8x128xf32>
    %6 = arith.negf %5 : vector<8x128xf32>
    %7 = math.exp %6 : vector<8x128xf32>
    %cst_5 = arith.constant 1.000000e+00 : f32
    %8 = vector.broadcast %cst_5 : f32 to vector<8x128xf32>
    %9 = arith.addf %8, %7 : vector<8x128xf32>
    %10 = arith.divf %8, %9 : vector<8x128xf32>
    %c0_6 = arith.constant 0 : index
    %c0_7 = arith.constant 0 : index
    %11 = vector.load %arg4[%c0_6, %c0_7] : memref<8x128xf32, #tpu.memory_space<vmem>>, vector<8x128xf32>
    tpu.vector_store %arg4[%c0_6, %c0_7], %10 {strides = array<i32>} : memref<8x128xf32, #tpu.memory_space<vmem>>, vector<8x128xf32>,
    return
  }
  func.func @transform_0(%arg0: i32) -> (i32, i32) {
    %c0_i32 = arith.constant 0 : i32
    %c0_i32_0 = arith.constant 0 : i32
    return %arg0, %c0_i32 : i32, i32
  }
  func.func @transform_1(%arg0: i32) -> (i32, i32) {
    %c0_i32 = arith.constant 0 : i32
    %c0_i32_0 = arith.constant 0 : i32
    %c0_i32_1 = arith.constant 0 : i32
    return %c0_i32, %c0_i32_0 : i32, i32
  }
  func.func @transform_2(%arg0: i32) -> (i32, i32) {
    %c0_i32 = arith.constant 0 : i32
    %c0_i32_0 = arith.constant 0 : i32
    %c0_i32_1 = arith.constant 0 : i32
    return %c0_i32, %c0_i32_0 : i32, i32
  }
  func.func @transform_3(%arg0: i32) -> (i32, i32) {
    %c0_i32 = arith.constant 0 : i32
    %c0_i32_0 = arith.constant 0 : i32
    return %arg0, %c0_i32 : i32, i32
  }
}

</mosaic_0001>

<bundles_post_ra>
// kernel: cls_forward.1
= control target key start
LH: loop header
LB: loop body
LE: loop exit
PB: predicated region body
PF: predicated region fallthrough
CT: control target
= control target key end

     0   :  { %8 = vsyncpa [#allocation3], 0  ;;  %s333_s0 = inlined_call_operand.hbm [shape: f32[8,32], index: 0, kind: input, shape index: {}]   ;;  %s334_s1 = inlined_call_operand.hbm [shape: f32[32,128], index: 1, kind: input, shape index: {}]   ;;  %s335_s2 = inlined_call_operand.vmem [shape: f32[1,128], index: 2, kind: input, shape index: {}]   ;;  %s336_s3 = inlined_call_operand.hbm [shape: f32[8,128], index: 3, kind: output, shape index: {}]  }
   0x1   :  { %9 = vsyncpa [#allocation6], 0 }
   0x2   :  { %10 = vsyncpa [#allocation4], 0  ;;  %s259_s12 = smov [#allocation2]   ;;  %s260_s14 = smov [#allocation5]  }
   0x3   :  { %s17_s13 = sshll.u32 %s259_s12, 4  ;;  %s26_s15 = sshll.u32 %s260_s14, 4  ;;  %s18_s13 = int_to_ptr.vmem [resolvable:$true] %s17_s13  ;;  %s287_s15 = int_to_ptr.vmem [resolvable:$true] %s26_s15 }
   0x4   :  { %s187_s18 = scalar_lea.hbm %s333_s0, 128 }
   0x5   :  { %p188_p0 = scmp.ne.s32.totalorder %s333_s0, %s187_s18  ;;  %p191_p1 = scmp.lt.u32.totalorder %s187_s18, %s333_s0 }
   0x7   :  { %p193_p2 = pnand %p191_p1, %p188_p0 }
   0x9   :  { %196 = shalt.err (!%p193_p2)
}
   0xa   :  { %s197_s23 = scalar_lea.vmem %s18_s13, 128  ;;  %p202_p4 = scmp.lt.s32.totalorder %s18_s13, %s18_s13 }
   0xb   :  { %p198_p3 = scmp.ne.s32.totalorder %s18_s13, %s197_s23  ;;  %p203_p5 = scmp.lt.s32.totalorder %s197_s23, %s197_s23 }
   0xd   :  { %p204_p6 = por %p203_p5, %p202_p4 }
   0xf   :  { %p205_p7 = pnand %p204_p6, %p198_p3 }
  0x11   :  { %208 = shalt.err (!%p205_p7)
}
  0x12   :  { %20 = dma.hbm_to_vmem [thread:$0]  %s333_s0, 128, %s18_s13, [#allocation3]  }
  0x13   :  { %s209_s28 = scalar_lea.hbm %s334_s1, 512 }
  0x14   :  { %p210_p8 = scmp.ne.s32.totalorder %s334_s1, %s209_s28  ;;  %p213_p9 = scmp.lt.u32.totalorder %s209_s28, %s334_s1 }
  0x16   :  { %p215_p10 = pnand %p213_p9, %p210_p8 }
  0x18   :  { %218 = shalt.err (!%p215_p10)
}
  0x19   :  { %s219_s6 = scalar_lea.vmem %s287_s15, 512  ;;  %p224_p12 = scmp.lt.s32.totalorder %s287_s15, %s287_s15 }
  0x1a   :  { %p220_p11 = scmp.ne.s32.totalorder %s287_s15, %s219_s6  ;;  %p225_p13 = scmp.lt.s32.totalorder %s219_s6, %s219_s6 }
  0x1c   :  { %p226_p0 = por %p225_p13, %p224_p12 }
  0x1e   :  { %p227_p1 = pnand %p226_p0, %p220_p11 }
  0x20   :  { %230 = shalt.err (!%p227_p1)
}
  0x21   :  { %s261_s0 = smov 128   ;;  %s262_s7 = smov 8  }
  0x22   :  { %32 = dma.hbm_to_vmem [thread:$0]  %s334_s1, 512, %s287_s15, [#allocation6], %s261_s0, %s261_s0, %s262_s7  }
  0x23   :  { %253 = dma.done.wait [#allocation3], 128  }
  0x24   :  { %254 = vsyncadd [#allocation3], 4294967168 }
  0x25   :  { %255 = dma.done.wait [#allocation6], 512  }
  0x26   :  { %256 = vsyncadd [#allocation6], 4294966784  ;;  %v263_v0 = vmov 0.0|0.0   ;;  %vm264_vm0 = vmmov 0   ;;  %v265_v1 = vmov 0.0   ;;  %v42_v2 = vld [vmem:[#allocation5] sm:$0xff] }
  0x27   :  { %169 = vmatprep.subr.bf16.mxu0 %v263_v0  ;;  %166 = vmatprep.mubr.msk.f32.mxu0 %vm264_vm0, %v265_v1  ;;  %v43_v3 = vld [vmem:[#allocation5 + $0x8] sm:$0xff]  ;;  %v44_v4 = vld [vmem:[#allocation5 + $0x10] sm:$0xff]  ;;  %v45_v6 = vld [vmem:[#allocation5 + $0x18] sm:$0xff]  ;;  %vm53_vm1 = vcmask 261120   ;;  %s266_s11 = smov [#allocation7]  }
  0x28   :  { %v170_v5 = vpack.c.bf16 %v43_v3, %v42_v2  ;;  %v173_v7 = vpack.c.bf16 %v45_v6, %v44_v4  ;;  %v41_v8 = vld [vmem:[#allocation2] sm:$0xff]  ;;  %s140_s12 = sshll.u32 %s266_s11, 4  ;;  %s141_s12 = int_to_ptr.vmem [resolvable:$true] %s140_s12 }
  0x29   :  { %v150_v9 = vld [vmem:[%s335_s2] ss:$0 sm:$0xff]  ;;  %s231_s13 = scalar_lea.vmem %s141_s12, 128  ;;  %p236_p3 = scmp.lt.s32.totalorder %s141_s12, %s141_s12 }
  0x2a   :  { %171 = vmatpush3.bf16.msra.mxu0 %v170_v5  ;;  %p232_p2 = scmp.ne.s32.totalorder %s141_s12, %s231_s13  ;;  %p237_p4 = scmp.lt.s32.totalorder %s231_s13, %s231_s13 }
  0x2b   :  { %172 = vmatprep.subr.bf16.mxu0 %v263_v0 }
  0x2c   :  { %p238_p5 = por %p237_p4, %p236_p3 }
  0x2e   :  { %174 = vmatpush3.bf16.msra.mxu0 %v173_v7  ;;  %p239_p6 = pnand %p238_p5, %p232_p2 }
  0x31   :  { %167 = vmatmul.mubr.msk.f32.vlgmr.msra.gmra.mrb[0].mxu0 %vm53_vm1, %v41_v8 }
 0x104   :  { %v123_v10 = vpop.f32.mrb[0].mxu0 }
 0x105   :  { %v124_v11 = vadd.f32 %v150_v9, %v123_v10  ;;  %v168_v12 = vpop.f32.mrb[1].mxu0 }
 0x107   :  { %v152_v13 = vmul.f32 -1.442695, %v124_v11 }
 0x109   :  { %183 = vpow2.f32 %v152_v13 }
 0x113   :  { %v184_v14 = vpop.eup %183 }
 0x114   :  { %v130_v15 = vadd.f32 1.0, %v184_v14 }
 0x116   :  { %185 = vrcp.f32 %v130_v15 }
 0x120   :  { %v186_v16 = vpop.eup %185 }
 0x121   :  { %133 = vst [vmem:[#allocation7] sm:$0xff] %v186_v16 }
 0x122   :  { %242 = shalt.err (!%p239_p6)
}
 0x123   :  { %s243_s15 = scalar_lea.hbm %s336_s3, 128 }
 0x124   :  { %p244_p7 = scmp.ne.s32.totalorder %s336_s3, %s243_s15  ;;  %p247_p8 = scmp.lt.u32.totalorder %s243_s15, %s336_s3 }
 0x126   :  { %p249_p9 = pnand %p247_p8, %p244_p7 }
 0x128   :  { %252 = shalt.err (!%p249_p9)
}
 0x129   :  { %143 = dma.vmem_to_hbm [thread:$0]  %s141_s12, 128, %s336_s3, [#allocation4]  }
 0x12a   :  { %257 = dma.done.wait [#allocation4], 128  }
 0x12b   :  { %258 = vsyncadd [#allocation4], 4294967168 }
 0x12c   :  { %147 = vsyncpa [#allocation3], 1 }
 0x12d   :  { %148 = vsyncpa [#allocation6], 1 }
 0x12e   :  { %149 = vsyncpa [#allocation4], 1 }

</bundles_post_ra>
